<compile_context>
chip_gen: v7x
topology: tpu7x:2x2x1
jax: 0.10.0
libtpu: 0.0.40
codegen_flags: <defaults>
</compile_context>

<pallas_src>
import functools

import jax
import jax.numpy as jnp
from jax.experimental import pallas as pl
from jax.experimental.pallas import tpu as pltpu

_LANES = 128          # full lane width -> unmasked vst, 8x denser than W=16
_MAX_BLOCK_ROWS = 1024  # 1024 x 128 f32 = 512 KiB/buffer; ~2 MiB double-buffered


def _identity_kernel(x_ref, o_ref):
    # Pure pass-through: the abstract Layer defines no transformation.
    o_ref[...] = x_ref[...]


def _pick_block_rows(rows: int) -> int:
    """Largest multiple-of-8 divisor of `rows` that is <= _MAX_BLOCK_ROWS."""
    if rows <= _MAX_BLOCK_ROWS:
        return rows
    for cand in range(_MAX_BLOCK_ROWS, 7, -8):
        if rows % cand == 0:
            return cand
    return rows  # no clean row tiling; fall back to one full-array block


@functools.partial(jax.jit, static_argnames=())
def layer_forward(x: jax.Array) -> jax.Array:
    """Forward pass of the (abstract) Layer as a Pallas TPU identity kernel.

    x: (N, C, H, W) float32, NCHW (PyTorch convention).
    Returns an array identical to x (shape, dtype, values).
    """
    orig_shape = x.shape
    total = x.size

    # Lane-dense 2-D view: last dim = 128 whenever the element count allows.
    if total % _LANES == 0:
        x2d = x.reshape(total // _LANES, _LANES)
    else:
        # TODO(synk): element counts not divisible by 128 fall back to a
        # lane-sparse (rows, last_dim) view; still correct, just slower stores.
        x2d = x.reshape(-1, orig_shape[-1])

    rows, lanes = x2d.shape
    block_rows = _pick_block_rows(rows)
    grid = (rows // block_rows,) if rows % block_rows == 0 else (1,)
    if grid == (1,):
        block_rows = rows  # whole-array block when tiling is not clean

    out2d = pl.pallas_call(
        _identity_kernel,
        out_shape=jax.ShapeDtypeStruct(x2d.shape, x2d.dtype),
        grid=grid,
        in_specs=[pl.BlockSpec((block_rows, lanes), lambda i: (i, 0))],
        out_specs=pl.BlockSpec((block_rows, lanes), lambda i: (i, 0)),
        # Identity path: let the output alias the input HBM buffer instead of
        # materializing a second HBM array.
        input_output_aliases={0: 0},
        compiler_params=pltpu.CompilerParams(
            dimension_semantics=("parallel",),
        ),
    )(x2d)

    return out2d.reshape(orig_shape)


if __name__ == "__main__":
    key = jax.random.PRNGKey(0)
    # Small NCHW input consistent with the module's conv-style interface.
    x = jax.random.normal(key, (2, 4, 16, 16), dtype=jnp.float32)

    y = layer_forward(x)
    y = jax.block_until_ready(y)

    # Sanity check: abstract Layer forward preserves the input exactly.
    assert y.shape == x.shape and y.dtype == x.dtype
    assert bool(jnp.allclose(y, x))

    print("KERNEL_OK")
</pallas_src>

<mosaic_0001>
module attributes {stable_mosaic.version = 11 : i64} {
  func.func @_identity_kernel(%arg0: i32, %arg1: memref<16x128xf32, #tpu.memory_space<vmem>>, %arg2: memref<16x128xf32, #tpu.memory_space<vmem>>) attributes {dimension_semantics = [#tpu.dimension_semantics<parallel>], iteration_bounds = array<i64: 1>, scalar_prefetch = 0 : i64, scratch_operands = 0 : i64, tpu.core_type = #tpu.core_type<tc>, window_params = [{transform_indices = @transform_0, window_bounds = array<i64: 16, 128>}, {transform_indices = @transform_1, window_bounds = array<i64: 16, 128>}]} {
    %c0 = arith.constant 0 : index
    %c0_0 = arith.constant 0 : index
    %0 = vector.load %arg1[%c0, %c0_0] : memref<16x128xf32, #tpu.memory_space<vmem>>, vector<16x128xf32>
    %c0_1 = arith.constant 0 : index
    %c0_2 = arith.constant 0 : index
    %1 = vector.load %arg2[%c0_1, %c0_2] : memref<16x128xf32, #tpu.memory_space<vmem>>, vector<16x128xf32>
    tpu.vector_store %arg2[%c0_1, %c0_2], %0 {strides = array<i32>} : memref<16x128xf32, #tpu.memory_space<vmem>>, vector<16x128xf32>,
    return
  }
  func.func @transform_0(%arg0: i32) -> (i32, i32) {
    %c0_i32 = arith.constant 0 : i32
    %c0_i32_0 = arith.constant 0 : i32
    return %arg0, %c0_i32 : i32, i32
  }
  func.func @transform_1(%arg0: i32) -> (i32, i32) {
    %c0_i32 = arith.constant 0 : i32
    %c0_i32_0 = arith.constant 0 : i32
    return %arg0, %c0_i32 : i32, i32
  }
}

</mosaic_0001>

<bundles_post_ra>
// kernel: layer_forward.1
= control target key start
LH: loop header
LB: loop body
LE: loop exit
PB: predicated region body
PF: predicated region fallthrough
CT: control target
= control target key end

     0   :  { %s38_s0 = inlined_call_operand.vmem [shape: f32[16,128], index: 0, kind: input, shape index: {}, may-alias: {0,1}]   ;;  %s39_s1 = inlined_call_operand.vmem [shape: f32[16,128], index: 1, kind: output, shape index: {}, may-alias: {0,1}]  }
   0x1   :  { %v8_v0 = vld [vmem:[%s38_s0] sm:$0xff]  ;;  %v9_v1 = vld [vmem:[%s38_s0 + $0x8] sm:$0xff] }
   0x2   :  { %10 = vst [vmem:[%s39_s1] sm:$0xff] %v8_v0  ;;  %11 = vst [vmem:[%s39_s1 + $0x8] sm:$0xff] %v9_v1 }

</bundles_post_ra>
